<compile_context>
chip_gen: v5e
topology: v5e:2x2
jax: 0.10.0
libtpu: 0.0.40
codegen_flags: <defaults>
</compile_context>

<pallas_src>
import functools

import jax
import jax.numpy as jnp
from jax.experimental import pallas as pl
from jax.experimental.pallas import tpu as pltpu

IN_FEATURES = 20
HIDDEN = 200
OUT_FEATURES = 5
DEFAULT_BLOCK_BATCH = 4096  # fits easily in scoped VMEM on v5e/v6e/v7x


def _round_up(n, m):
    return ((n + m - 1) // m) * m


def mlp_kernel(x_ref, w1_ref, b1_ref, w2_ref, b2_ref, o_ref):
    # Cast x to bf16 in-kernel (no separate XLA convert pass over HBM).
    x_bf = x_ref[...].astype(jnp.bfloat16)
    # Hidden layer: bf16 MXU matmul, f32 accumulate; bias + ReLU on the VPU.
    h = jnp.dot(x_bf, w1_ref[...], preferred_element_type=jnp.float32)
    h = jnp.maximum(h + b1_ref[...], 0.0)
    # Output layer: bf16 MXU matmul, f32 accumulate; bias add; narrow f32 store.
    out = jnp.dot(h.astype(jnp.bfloat16), w2_ref[...],
                  preferred_element_type=jnp.float32)
    o_ref[...] = (out + b2_ref[...]).astype(o_ref.dtype)


@functools.partial(jax.jit, static_argnames=("block_batch",))
def final_net_forward(x, w1, b1, w2, b2, *, block_batch=DEFAULT_BLOCK_BATCH):
    """Forward pass of FinalNet.

    x:  [B, 20]   features (f32)
    w1: [20, 200] (in x out, i.e. PyTorch weight.T)   b1: [200] or [1, 200]
    w2: [200, 5]  (in x out)                          b2: [5]   or [1, 5]
    returns [B, 5]
    """
    B, in_features = x.shape
    hid = w1.shape[1]
    out_features = w2.shape[1]

    # Accept PyTorch-style 1-D bias vectors.
    b1_f = jnp.reshape(b1, (1, hid)).astype(jnp.float32)
    b2_f = jnp.reshape(b2, (1, out_features)).astype(jnp.float32)

    # Weights to bf16 for the MXU (tiny, one-time conversion).
    w1_bf = w1.astype(jnp.bfloat16)
    w2_bf = w2.astype(jnp.bfloat16)

    # --- batch tiling ----------------------------------------------------------
    # Round batch up to a multiple of 16 and split it evenly into the minimum
    # number of grid steps (>= 2 when possible so both v7x TCs get work).
    b_r = _round_up(B, 16)
    n_steps = max(pl.cdiv(b_r, block_batch), 2 if b_r >= 32 else 1)
    tb = _round_up(pl.cdiv(b_r, n_steps), 16)
    b_pad = _round_up(B, tb)

    x_in = x
    if b_pad != B:
        x_in = jnp.pad(x_in, ((0, b_pad - B), (0, 0)))

    grid = (b_pad // tb,)

    cost = pl.CostEstimate(
        flops=2 * b_pad * (in_features * hid + hid * out_features),
        transcendentals=0,
        bytes_accessed=(b_pad * in_features * x_in.dtype.itemsize
                        + in_features * hid * 2      # w1 bf16
                        + hid * out_features * 2     # w2 bf16
                        + hid * 4 + out_features * 4 # biases f32
                        + b_pad * out_features * 4), # output f32
    )

    out = pl.pallas_call(
        mlp_kernel,
        out_shape=jax.ShapeDtypeStruct((b_pad, out_features), jnp.float32),
        grid=grid,
        in_specs=[
            # batch-tiled activations (last dim == full array dim -> legal)
            pl.BlockSpec((tb, in_features), lambda i: (i, 0)),
            # weights/biases: constant index_map -> DMA'd once, resident in VMEM
            pl.BlockSpec((in_features, hid), lambda i: (0, 0)),
            pl.BlockSpec((1, hid), lambda i: (0, 0)),
            pl.BlockSpec((hid, out_features), lambda i: (0, 0)),
            pl.BlockSpec((1, out_features), lambda i: (0, 0)),
        ],
        out_specs=pl.BlockSpec((tb, out_features), lambda i: (i, 0)),
        compiler_params=pltpu.CompilerParams(
            dimension_semantics=("parallel",),   # batch axis split across v7x's 2 TCs
        ),
        cost_estimate=cost,
    )(x_in, w1_bf, b1_f, w2_bf, b2_f)

    if b_pad != B:
        out = out[:B]
    return out.astype(x.dtype)


def init_params(key):
    # Deterministic init mimicking nn.Linear default: U(-1/sqrt(fan_in), +1/sqrt(fan_in)).
    k1, k2, k3, k4 = jax.random.split(key, 4)
    in1, hid, out = IN_FEATURES, HIDDEN, OUT_FEATURES
    bound1 = 1.0 / (in1 ** 0.5)
    bound2 = 1.0 / (hid ** 0.5)
    w1 = jax.random.uniform(k1, (in1, hid), jnp.float32, -bound1, bound1)
    b1 = jax.random.uniform(k2, (1, hid), jnp.float32, -bound1, bound1)
    w2 = jax.random.uniform(k3, (hid, out), jnp.float32, -bound2, bound2)
    b2 = jax.random.uniform(k4, (1, out), jnp.float32, -bound2, bound2)
    return w1, b1, w2, b2


if __name__ == "__main__":
    key = jax.random.PRNGKey(0)
    k_x, k_p = jax.random.split(key)

    B = 8  # small batch for the smoke test
    x = jax.random.normal(k_x, (B, IN_FEATURES), jnp.float32)
    w1, b1, w2, b2 = init_params(k_p)

    out = final_net_forward(x, w1, b1, w2, b2)
    out = jax.block_until_ready(out)
    assert out.shape == (B, OUT_FEATURES)

    # Reference using the same bf16-input / f32-accumulate math as the kernel.
    ref_h = jnp.maximum(
        jnp.dot(x.astype(jnp.bfloat16), w1.astype(jnp.bfloat16),
                preferred_element_type=jnp.float32) + b1, 0.0)
    ref = jnp.dot(ref_h.astype(jnp.bfloat16), w2.astype(jnp.bfloat16),
                  preferred_element_type=jnp.float32) + b2
    assert jnp.allclose(out, ref, atol=1e-3, rtol=1e-3)

    # Loose check against the pure-f32 PyTorch-equivalent forward (bf16 quantization noise).
    ref_f32 = jnp.maximum(x @ w1 + b1, 0.0) @ w2 + b2
    assert jnp.allclose(out, ref_f32, atol=5e-2, rtol=5e-2)

    print("KERNEL_OK")
</pallas_src>

<mosaic_0001>
module attributes {stable_mosaic.version = 11 : i64} {
  func.func @mlp_kernel(%arg0: i32, %arg1: memref<16x20xf32, #tpu.memory_space<vmem>>, %arg2: memref<20x200xbf16, #tpu.memory_space<vmem>>, %arg3: memref<1x200xf32, #tpu.memory_space<vmem>>, %arg4: memref<200x5xbf16, #tpu.memory_space<vmem>>, %arg5: memref<1x5xf32, #tpu.memory_space<vmem>>, %arg6: memref<16x5xf32, #tpu.memory_space<vmem>>) attributes {dimension_semantics = [#tpu.dimension_semantics<parallel>], iteration_bounds = array<i64: 1>, scalar_prefetch = 0 : i64, scratch_operands = 0 : i64, tpu.core_type = #tpu.core_type<tc>, window_params = [{transform_indices = @transform_0, window_bounds = array<i64: 16, 20>}, {pipeline_mode = #tpu.pipeline_mode<synchronous>, transform_indices = @transform_1, window_bounds = array<i64: 20, 200>}, {pipeline_mode = #tpu.pipeline_mode<synchronous>, transform_indices = @transform_2, window_bounds = array<i64: 1, 200>}, {pipeline_mode = #tpu.pipeline_mode<synchronous>, transform_indices = @transform_3, window_bounds = array<i64: 200, 5>}, {pipeline_mode = #tpu.pipeline_mode<synchronous>, transform_indices = @transform_4, window_bounds = array<i64: 1, 5>}, {transform_indices = @transform_5, window_bounds = array<i64: 16, 5>}]} {
    %c0 = arith.constant 0 : index
    %c0_0 = arith.constant 0 : index
    %0 = vector.load %arg1[%c0, %c0_0] : memref<16x20xf32, #tpu.memory_space<vmem>>, vector<16x20xf32>
    %1 = arith.truncf %0 : vector<16x20xf32> to vector<16x20xbf16>
    %c0_1 = arith.constant 0 : index
    %c0_2 = arith.constant 0 : index
    %2 = vector.load %arg2[%c0_1, %c0_2] : memref<20x200xbf16, #tpu.memory_space<vmem>>, vector<20x200xbf16>
    %cst = arith.constant dense<0.000000e+00> : vector<16x200xf32>
    %3 = tpu.matmul %1, %2, %cst {dimension_numbers = #tpu.dot_dimension_numbers<[1], [0], [0], [1], [0, 0, 1, 1], [], []>} : vector<16x20xbf16>, vector<20x200xbf16>, vector<16x200xf32> -> vector<16x200xf32>
    %c0_3 = arith.constant 0 : index
    %c0_4 = arith.constant 0 : index
    %4 = vector.load %arg3[%c0_3, %c0_4] : memref<1x200xf32, #tpu.memory_space<vmem>>, vector<1x200xf32>
    %5 = vector.broadcast %4 : vector<1x200xf32> to vector<16x200xf32>
    %6 = arith.addf %3, %5 : vector<16x200xf32>
    %cst_5 = arith.constant 0.000000e+00 : f32
    %7 = vector.broadcast %cst_5 : f32 to vector<16x200xf32>
    %8 = arith.maximumf %6, %7 : vector<16x200xf32>
    %9 = arith.truncf %8 : vector<16x200xf32> to vector<16x200xbf16>
    %c0_6 = arith.constant 0 : index
    %c0_7 = arith.constant 0 : index
    %10 = vector.load %arg4[%c0_6, %c0_7] : memref<200x5xbf16, #tpu.memory_space<vmem>>, vector<200x5xbf16>
    %cst_8 = arith.constant dense<0.000000e+00> : vector<16x5xf32>
    %11 = tpu.matmul %9, %10, %cst_8 {dimension_numbers = #tpu.dot_dimension_numbers<[1], [0], [0], [1], [0, 0, 1, 1], [], []>} : vector<16x200xbf16>, vector<200x5xbf16>, vector<16x5xf32> -> vector<16x5xf32>
    %c0_9 = arith.constant 0 : index
    %c0_10 = arith.constant 0 : index
    %12 = vector.load %arg5[%c0_9, %c0_10] : memref<1x5xf32, #tpu.memory_space<vmem>>, vector<1x5xf32>
    %13 = vector.broadcast %12 : vector<1x5xf32> to vector<16x5xf32>
    %14 = arith.addf %11, %13 : vector<16x5xf32>
    %c0_11 = arith.constant 0 : index
    %c0_12 = arith.constant 0 : index
    %15 = vector.load %arg6[%c0_11, %c0_12] : memref<16x5xf32, #tpu.memory_space<vmem>>, vector<16x5xf32>
    tpu.vector_store %arg6[%c0_11, %c0_12], %14 {strides = array<i32>} : memref<16x5xf32, #tpu.memory_space<vmem>>, vector<16x5xf32>,
    return
  }
  func.func @transform_0(%arg0: i32) -> (i32, i32) {
    %c0_i32 = arith.constant 0 : i32
    %c0_i32_0 = arith.constant 0 : i32
    return %arg0, %c0_i32 : i32, i32
  }
  func.func @transform_1(%arg0: i32) -> (i32, i32) {
    %c0_i32 = arith.constant 0 : i32
    %c0_i32_0 = arith.constant 0 : i32
    %c0_i32_1 = arith.constant 0 : i32
    return %c0_i32, %c0_i32_0 : i32, i32
  }
  func.func @transform_2(%arg0: i32) -> (i32, i32) {
    %c0_i32 = arith.constant 0 : i32
    %c0_i32_0 = arith.constant 0 : i32
    %c0_i32_1 = arith.constant 0 : i32
    return %c0_i32, %c0_i32_0 : i32, i32
  }
  func.func @transform_3(%arg0: i32) -> (i32, i32) {
    %c0_i32 = arith.constant 0 : i32
    %c0_i32_0 = arith.constant 0 : i32
    %c0_i32_1 = arith.constant 0 : i32
    return %c0_i32, %c0_i32_0 : i32, i32
  }
  func.func @transform_4(%arg0: i32) -> (i32, i32) {
    %c0_i32 = arith.constant 0 : i32
    %c0_i32_0 = arith.constant 0 : i32
    %c0_i32_1 = arith.constant 0 : i32
    return %c0_i32, %c0_i32_0 : i32, i32
  }
  func.func @transform_5(%arg0: i32) -> (i32, i32) {
    %c0_i32 = arith.constant 0 : i32
    %c0_i32_0 = arith.constant 0 : i32
    return %arg0, %c0_i32 : i32, i32
  }
}

</mosaic_0001>

<bundles_post_ra>
// kernel: final_net_forward.1
= control target key start
LH: loop header
LB: loop body
LE: loop exit
PB: predicated region body
PF: predicated region fallthrough
CT: control target
= control target key end

     0   :  { %vm52_vm0 = vcmask 1041408   ;;  %vm201_vm1 = vcmask 1043456   ;;  %vm48_vm2 = vcmask 162816   ;;  %vm197_vm3 = vcmask 588800   ;;  %s416_s1 = inlined_call_operand.vmem [shape: bf16[20,200], index: 1, kind: input, shape index: {}]   ;;  %s417_s3 = inlined_call_operand.vmem [shape: bf16[200,5], index: 3, kind: input, shape index: {}]   ;;  %s418_s0 = inlined_call_operand.vmem [shape: f32[16,20], index: 0, kind: input, shape index: {}]   ;;  %s419_s4 = inlined_call_operand.vmem [shape: f32[1,5], index: 4, kind: input, shape index: {}]   ;;  %s420_s2 = inlined_call_operand.vmem [shape: f32[1,200], index: 2, kind: input, shape index: {}]   ;;  %s421_s5 = inlined_call_operand.vmem [shape: f32[16,5], index: 5, kind: output, shape index: {}]  }
   0x1   :  { %v26_v0 = vld [vmem:[%s416_s1 + $0x10] sm:$0x33]  ;;  %v242_v3 = vld [vmem:[%s416_s1] sm:$0xf]  ;;  %v300_v4 = vld [vmem:[%s416_s1 + $0x4] sm:$0xf0] }
   0x2   :  { %v40_v1 = vunpack.c.l.b16 %v26_v0  ;;  %v41_v2 = vunpack.c.h.b16 %v26_v0  ;;  %v308_v5 = vld [vmem:[%s417_s3 + $0x38] sm:$0xff]  ;;  %v299_v8 = vld [vmem:[%s416_s1 + $0x4] sm:$0xf]  ;;  %v244_v9 = vld [vmem:[%s416_s1 + $0x8] sm:$0xf0]  ;;  %v243_v15 = vor.u32 %v300_v4, %v242_v3  ;;  %vm233_vm4 = vcmask 39936  }
   0x3   :  { %v117_v10 = vld [vmem:[%s417_s3 + $0x60] sm:$0xf]  ;;  %205 = vmatpush.bf16.msra.mxu2 %v308_v5  ;;  %v307_v11 = vld [vmem:[%s417_s3 + $0x30] sm:$0xff]  ;;  %v247_v16 = vor.u32 %v299_v8, %v244_v9  ;;  %v22_v18 = vld [vmem:[%s418_s0 + $0x8] sm:$0xff] }
   0x4   :  { %v44_v6 = vpack.c.b16 %v40_v1, %v40_v1  ;;  %v45_v7 = vpack.c.b16 %v41_v2, %v41_v2  ;;  %v171_v12 = vunpack.c.l.b16 %v117_v10  ;;  %v21_v17 = vld [vmem:[%s418_s0] sm:$0xff]  ;;  %v306_v20 = vld [vmem:[%s417_s3 + $0x28] sm:$0xff]  ;;  %v304_v24 = vld [vmem:[%s417_s3 + $0x18] sm:$0xff] }
   0x5   :  { %v23_v22 = vpack.c.bf16 %v22_v18, %v21_v17  ;;  %v305_v23 = vld [vmem:[%s417_s3 + $0x20] sm:$0xff]  ;;  %v312_v25 = vld [vmem:[%s417_s3 + $0x58] sm:$0xff]  ;;  %v303_v26 = vld [vmem:[%s417_s3 + $0x10] sm:$0xff] }
   0x6   :  { %v54_v13 = vsel %vm52_vm0, %v44_v6, 0  ;;  %v57_v14 = vsel %vm52_vm0, %v45_v7, 0  ;;  %v184_v19 = vpack.c.b16 %v171_v12, %v171_v12  ;;  %v311_v27 = vld [vmem:[%s417_s3 + $0x50] sm:$0xff]  ;;  %v302_v28 = vld [vmem:[%s417_s3 + $0x8] sm:$0xff]  ;;  %v301_v30 = vld [vmem:[%s417_s3] sm:$0xff] }
   0x7   :  { %65 = vmatpush.bf16.msra.mxu0 %v54_v13  ;;  %79 = vmatpush.bf16.msra.mxu1 %v57_v14  ;;  %v310_v29 = vld [vmem:[%s417_s3 + $0x48] sm:$0xff]  ;;  %v309_v31 = vld [vmem:[%s417_s3 + $0x40] sm:$0xff] }
   0x8   :  { %206 = vmatpush.bf16.msra.mxu2 %v307_v11  ;;  %v203_v21 = vsel %vm201_vm1, %v184_v19, 0  ;;  %v27_v32 = vld [vmem:[%s420_s2] sm:$0x3] }
   0x9   :  { %222 = vmatpush.bf16.msra.mxu3 %v203_v21  ;;  %v29_v35 = vperm.slane %v27_v32, 0  ;;  %v30_v36 = vperm.slane %v27_v32, 1  ;;  %v313_v49 = vld [vmem:[%s419_s4] ss:$0 sm:$0xff] }
   0xb   :  { %66 = vmatpush.bf16.msra.mxu0 %v243_v15  ;;  %80 = vmatpush.bf16.msra.mxu1 %v247_v16 }
   0xc   :  { %207 = vmatpush.bf16.msra.mxu2 %v306_v20 }
   0xd   :  { %223 = vmatpush.bf16.msra.mxu3 %v312_v25 }
   0xe   :  { %248 = vmatmul.msk.bf16.vlgmr.msra.gmra.mxu0 %vm48_vm2, %v23_v22  ;;  %249 = vmatmul.msk.bf16.vlgmr.msra.gmra.mxu1 %vm48_vm2, %v23_v22 }
  0x10   :  { %208 = vmatpush.bf16.msra.mxu2 %v305_v23 }
  0x11   :  { %224 = vmatpush.bf16.msra.mxu3 %v311_v27 }
  0x14   :  { %209 = vmatpush.bf16.msra.mxu2 %v304_v24 }
  0x15   :  { %225 = vmatpush.bf16.msra.mxu3 %v310_v29 }
  0x18   :  { %210 = vmatpush.bf16.msra.mxu2 %v303_v26 }
  0x19   :  { %226 = vmatpush.bf16.msra.mxu3 %v309_v31 }
  0x1c   :  { %211 = vmatpush.bf16.msra.mxu2 %v302_v28 }
  0x20   :  { %212 = vmatpush.bf16.msra.mxu2 %v301_v30 }
  0x8b   :  { %v68_v33 = vpop.f32.mrf.mxu0  ;;  %v82_v34 = vpop.f32.mrf.mxu1 }
  0x8c   :  { %v69_v37 = vadd.f32 %v68_v33, %v29_v35  ;;  %v83_v38 = vadd.f32 %v82_v34, %v30_v36 }
  0x8e   :  { %v87_v43 = vmax.f32 %v69_v37, 0.0  ;;  %v88_v44 = vmax.f32 %v83_v38, 0.0 }
  0x93   :  { %v70_v39 = vpop.f32.mrf.mxu0  ;;  %v84_v40 = vpop.f32.mrf.mxu1 }
  0x94   :  { %v71_v41 = vadd.f32 %v70_v39, %v29_v35  ;;  %v85_v42 = vadd.f32 %v84_v40, %v30_v36 }
  0x96   :  { %v89_v45 = vmax.f32 %v71_v41, 0.0  ;;  %v90_v46 = vmax.f32 %v85_v42, 0.0 }
  0x98   :  { %v92_v47 = vpack.c.bf16 %v90_v46, %v88_v44  ;;  %v91_v48 = vpack.c.bf16 %v89_v45, %v87_v43 }
  0x9a   :  { %213 = vmatmul.bf16.vlgmr.msra.gmra.mxu2 %v91_v48  ;;  %298 = vmatmul.msk.bf16.vlgmr.msra.gmra.mxu3 %vm197_vm3, %v92_v47 }
 0x11d   :  { %v214_v50 = vpop.f32.mrf.mxu2  ;;  %v228_v51 = vpop.f32.mrf.mxu3 }
 0x11e   :  { %v215_v52 = vadd.f32 %v313_v49, %v214_v50 }
 0x120   :  { %v229_v53 = vadd.f32 %v228_v51, %v215_v52 }
 0x122   :  { %234 = vst.msk [vmem:[%s421_s5] sm:$0xff] %vm233_vm4, %v229_v53 }
 0x125   :  { %v216_v54 = vpop.f32.mrf.mxu2  ;;  %v230_v56 = vpop.f32.mrf.mxu3 }
 0x126   :  { %v217_v55 = vadd.f32 %v313_v49, %v216_v54 }
 0x128   :  { %v231_v57 = vadd.f32 %v230_v56, %v217_v55 }
 0x12a   :  { %235 = vst.msk [vmem:[%s421_s5 + $0x8] sm:$0xff] %vm233_vm4, %v231_v57 }

</bundles_post_ra>
